<compile_context>
chip_gen: v7x
topology: tpu7x:2x2x1
jax: 0.10.0
libtpu: 0.0.40
codegen_flags: <defaults>
</compile_context>

<pallas_src>
import jax
import jax.numpy as jnp
from jax.experimental import pallas as pl
from jax.experimental.pallas import tpu as pltpu

# ---- test problem sizes (small, consistent with the module's forward) ------
B, T = 2, 3          # batch, timesteps
CIN, COUT = 4, 8     # channels of the synthetic td_net Conv2d
H, W = 16, 16        # spatial
KH, KW = 3, 3        # kernel taps (padding=1 -> "same")

# Fixed upper bound on the lane (pixel) tile: keeps the (COUT, cols_blk) f32
# accumulator at <= 4096/128 = 32 vregs and bounds double-buffered VMEM on all
# of v5e (16 MiB scoped), v6e (32 MiB) and v7x (32/64 MiB).
MAX_COLS_BLK = 4096


def _td_conv_kernel(x_ref, w_ref, b_ref, o_ref):
    """One grid step = one image's lane-dense im2col slab.

    x_ref : (K, cols_blk)     K-major im2col block, K = CIN*KH*KW
    w_ref : (COUT, K)         flattened conv weight (tiny, resident)
    b_ref : (COUT, 1)         bias (broadcast over the lane axis)
    o_ref : (COUT, cols_blk)  lane-dense output block (already final layout)
    """
    acc = jnp.dot(w_ref[...], x_ref[...], preferred_element_type=jnp.float32)
    o_ref[...] = (acc + b_ref[...]).astype(o_ref.dtype)


def time_distributed_conv(x_btchw, weight, bias):
    """TimeDistributed5D(Conv2d(cin, cout, kh x kw, padding='same'), timesteps=T).

    x_btchw : (B, T, Cin, H, W) float32
    weight  : (Cout, Cin, KH, KW) float32  (PyTorch Conv2d layout)
    bias    : (Cout,) float32
    returns : (B, T, Cout, H, W) float32
    """
    b, t, cin, h, w = x_btchw.shape
    cout, cin_w, kh, kw = weight.shape
    assert cin_w == cin, "weight/input channel mismatch"
    n = b * t
    hw = h * w
    k = cin * kh * kw
    ph, pw = kh // 2, kw // 2

    # --- glue: K-major im2col, no minor-dim transpose -----------------------
    x = x_btchw.reshape(n, cin, h, w)                           # (N, C, H, W)
    xp = jnp.pad(x, ((0, 0), (0, 0), (ph, ph), (pw, pw)))       # "same" padding
    taps = [xp[:, :, dh:dh + h, dw:dw + w]                      # each (N, C, H, W)
            for dh in range(kh) for dw in range(kw)]
    # (N, C, KH*KW, H, W) -> (N, K, H*W); adjacent-axis merges only (no transpose).
    xcol = jnp.stack(taps, axis=2).reshape(n, k, hw)

    # PyTorch (COUT, CIN, KH, KW) flattens to the same (cin, kh, kw) K order.
    wt = weight.reshape(cout, k)
    b2 = bias.reshape(cout, 1)

    # --- fixed lane tile over the pixel axis --------------------------------
    if hw <= MAX_COLS_BLK:
        cols_blk, col_tiles = hw, 1                   # full-extent last dim
    else:
        cols_blk = MAX_COLS_BLK
        assert hw % cols_blk == 0, "H*W must tile by the fixed column block"
        col_tiles = hw // cols_blk

    flops = 2 * n * hw * k * cout
    bytes_accessed = 4 * (n * k * hw + cout * k + cout + n * cout * hw)

    out = pl.pallas_call(
        _td_conv_kernel,
        out_shape=jax.ShapeDtypeStruct((n, cout, hw), jnp.float32),
        grid_spec=pltpu.PrefetchScalarGridSpec(
            num_scalar_prefetch=0,
            grid=(n, col_tiles),
            in_specs=[
                # per-image, per-column-tile im2col slab (leading dim squeezed)
                pl.BlockSpec((None, k, cols_blk), lambda i, j: (i, 0, j)),
                # tiny resident weight / bias
                pl.BlockSpec((cout, k), lambda i, j: (0, 0)),
                pl.BlockSpec((cout, 1), lambda i, j: (0, 0)),
            ],
            # output lands directly in (N, COUT, H*W): no writeback transpose
            out_specs=pl.BlockSpec((None, cout, cols_blk), lambda i, j: (i, 0, j)),
        ),
        compiler_params=pltpu.CompilerParams(
            dimension_semantics=("parallel", "parallel")),
        cost_estimate=pl.CostEstimate(flops=flops, transcendentals=0,
                                      bytes_accessed=bytes_accessed),
    )(xcol, wt, b2)

    # --- glue: free reshape back to the module's (B, T, Cout, H, W) view ----
    return out.reshape(b, t, cout, h, w)


def _reference(x_btchw, weight, bias):
    """Pure-JAX reference of the same forward (for a sanity check)."""
    b, t, cin, h, w = x_btchw.shape
    cout = weight.shape[0]
    x = x_btchw.reshape(b * t, cin, h, w)
    out = jax.lax.conv_general_dilated(
        x, weight, window_strides=(1, 1), padding="SAME",
        dimension_numbers=("NCHW", "OIHW", "NCHW"))
    out = out + bias.reshape(1, cout, 1, 1)
    return out.reshape(b, t, cout, h, w)


if __name__ == "__main__":
    key = jax.random.PRNGKey(0)
    kx, kw_, kb = jax.random.split(key, 3)

    x = jax.random.normal(kx, (B, T, CIN, H, W), dtype=jnp.float32)
    # Deterministic synthetic Conv2d parameters (PyTorch shapes).
    weight = jax.random.normal(kw_, (COUT, CIN, KH, KW), dtype=jnp.float32) * 0.1
    bias = jax.random.normal(kb, (COUT,), dtype=jnp.float32) * 0.1

    out = time_distributed_conv(x, weight, bias)
    out = jax.block_until_ready(out)

    ref = jax.block_until_ready(_reference(x, weight, bias))
    assert out.shape == (B, T, COUT, H, W)
    assert jnp.allclose(out, ref, atol=1e-4, rtol=1e-4)

    print("KERNEL_OK")
</pallas_src>

<mosaic_0001>
module attributes {stable_mosaic.version = 11 : i64} {
  func.func @_td_conv_kernel(%arg0: i32, %arg1: i32, %arg2: memref<1x36x256xf32, #tpu.memory_space<vmem>>, %arg3: memref<8x36xf32, #tpu.memory_space<vmem>>, %arg4: memref<8x1xf32, #tpu.memory_space<vmem>>, %arg5: memref<1x8x256xf32, #tpu.memory_space<vmem>>) attributes {dimension_semantics = [#tpu.dimension_semantics<parallel>, #tpu.dimension_semantics<parallel>], iteration_bounds = array<i64: 6, 1>, scalar_prefetch = 0 : i64, scratch_operands = 0 : i64, tpu.core_type = #tpu.core_type<tc>, window_params = [{transform_indices = @transform_0, window_bounds = array<i64: 1, 36, 256>}, {pipeline_mode = #tpu.pipeline_mode<synchronous>, transform_indices = @transform_1, window_bounds = array<i64: 8, 36>}, {pipeline_mode = #tpu.pipeline_mode<synchronous>, transform_indices = @transform_2, window_bounds = array<i64: 8, 1>}, {transform_indices = @transform_3, window_bounds = array<i64: 1, 8, 256>}]} {
    %c0 = arith.constant 0 : index
    %c0_0 = arith.constant 0 : index
    %0 = vector.load %arg3[%c0, %c0_0] : memref<8x36xf32, #tpu.memory_space<vmem>>, vector<8x36xf32>
    %c0_1 = arith.constant 0 : index
    %c0_2 = arith.constant 0 : index
    %c0_3 = arith.constant 0 : index
    %1 = vector.load %arg2[%c0_1, %c0_2, %c0_3] : memref<1x36x256xf32, #tpu.memory_space<vmem>>, vector<1x36x256xf32>
    %2 = vector.shape_cast %1 : vector<1x36x256xf32> to vector<36x256xf32>
    %cst = arith.constant dense<0.000000e+00> : vector<8x256xf32>
    %3 = tpu.matmul %0, %2, %cst {dimension_numbers = #tpu.dot_dimension_numbers<[1], [0], [0], [1], [0, 0, 1, 1], [], []>} : vector<8x36xf32>, vector<36x256xf32>, vector<8x256xf32> -> vector<8x256xf32>
    %c0_4 = arith.constant 0 : index
    %c0_5 = arith.constant 0 : index
    %4 = vector.load %arg4[%c0_4, %c0_5] : memref<8x1xf32, #tpu.memory_space<vmem>>, vector<8x1xf32>
    %5 = vector.broadcast %4 : vector<8x1xf32> to vector<8x256xf32>
    %6 = arith.addf %3, %5 : vector<8x256xf32>
    %c0_6 = arith.constant 0 : index
    %c0_7 = arith.constant 0 : index
    %c0_8 = arith.constant 0 : index
    %7 = vector.load %arg5[%c0_6, %c0_7, %c0_8] : memref<1x8x256xf32, #tpu.memory_space<vmem>>, vector<1x8x256xf32>
    %8 = vector.shape_cast %7 : vector<1x8x256xf32> to vector<8x256xf32>
    %9 = vector.shape_cast %6 : vector<8x256xf32> to vector<1x8x256xf32>
    tpu.vector_store %arg5[%c0_6, %c0_7, %c0_8], %9 {strides = array<i32>} : memref<1x8x256xf32, #tpu.memory_space<vmem>>, vector<1x8x256xf32>,
    return
  }
  func.func @transform_0(%arg0: i32, %arg1: i32) -> (i32, i32, i32) {
    %c0_i32 = arith.constant 0 : i32
    %c0_i32_0 = arith.constant 0 : i32
    return %arg0, %c0_i32, %arg1 : i32, i32, i32
  }
  func.func @transform_1(%arg0: i32, %arg1: i32) -> (i32, i32) {
    %c0_i32 = arith.constant 0 : i32
    %c0_i32_0 = arith.constant 0 : i32
    %c0_i32_1 = arith.constant 0 : i32
    return %c0_i32, %c0_i32_0 : i32, i32
  }
  func.func @transform_2(%arg0: i32, %arg1: i32) -> (i32, i32) {
    %c0_i32 = arith.constant 0 : i32
    %c0_i32_0 = arith.constant 0 : i32
    %c0_i32_1 = arith.constant 0 : i32
    return %c0_i32, %c0_i32_0 : i32, i32
  }
  func.func @transform_3(%arg0: i32, %arg1: i32) -> (i32, i32, i32) {
    %c0_i32 = arith.constant 0 : i32
    %c0_i32_0 = arith.constant 0 : i32
    return %arg0, %c0_i32, %arg1 : i32, i32, i32
  }
}

</mosaic_0001>

<bundles_post_ra>
// kernel: tpu_custom_call.1
= control target key start
LH: loop header
LB: loop body
LE: loop exit
PB: predicated region body
PF: predicated region fallthrough
CT: control target
= control target key end

     0   :  { %8 = vsyncpa [#allocation3], 0  ;;  %s823_s0 = inlined_call_operand.hbm [shape: f32[6,36,256], index: 0, kind: input, shape index: {}]   ;;  %s824_s1 = inlined_call_operand.vmem [shape: f32[8,36], index: 1, kind: input, shape index: {}]   ;;  %s825_s2 = inlined_call_operand.vmem [shape: f32[8,1], index: 2, kind: input, shape index: {}]   ;;  %s826_s3 = inlined_call_operand.hbm [shape: f32[6,8,256], index: 3, kind: output, shape index: {}]  }
   0x1   :  { %10 = vsyncpa [#allocation3 + $0x1], 0 }
   0x2   :  { %11 = vsyncpa [#allocation4], 0 }
   0x3   :  { %13 = vsyncpa [#allocation4 + $0x1], 0  ;;  %s645_s12 = smov 0   ;;  %s647_s13 = smov 0  }
   0x4   :  { %s649_s14 = smov 0   ;;  %s651_s15 = smov 0  }
   0x5   :  { %s653_s16 = smov 0   ;;  %s655_s17 = smov 0  }
   0x6 LB: > { %s411_s18 = sadd.s32 4294967295, %s617_s17   ;;  %s412_s19 = sadd.s32 4294967294, %s617_s17   ;;  %s617_s17 = sphi %s655_s17, %s19_s17   ;;  %s613_s16 = sphi %s653_s16, %s840_s16   ;;  %s609_s15 = sphi %s651_s15, %s839_s15   ;;  %s605_s14 = sphi %s649_s14, %s838_s14   ;;  %s601_s13 = sphi %s647_s13, %s837_s13   ;;  %s597_s12 = sphi %s645_s12, %s836_s12  }
   0x7   : > { %s31_s20 = sadd.s32 1, %s613_s16  ;;  %s40_s21 = sadd.s32 1, %s605_s14 }
   0x8   : > { %p33_p0 = scmp.ge.s32.totalorder %s31_s20, 6  ;;  %p47_p1 = scmp.ne.s32.totalorder %s605_s14, %s601_s13 }
   0x9   : > { %p48_p2 = scmp.eq.s32.totalorder %s617_s17, 0  ;;  %p53_p3 = scmp.ne.s32.totalorder %s601_s13, %s597_s12 }
   0xa   : > { %s842_s20 = smov (%p33_p0, %s31_s20), 0  ;;  %p54_p5 = scmp.eq.s32.totalorder %s411_s18, 0 }
   0xb   : > { %p686_p4 = por %p48_p2, %p47_p1  ;;  %s35_s23 = ssub.s32 %s613_s16, %s842_s20 }
   0xc   : > { %p121_p6 = scmp.eq.s32.totalorder %s411_s18, 5  ;;  %p38_p7 = scmp.eq.s32.totalorder %s35_s23, 0 }
   0xd   : > { %p692_p8 = por %p54_p5, %p53_p3  ;;  %p127_p10 = scmp.eq.s32.totalorder %s412_s19, 5 }
   0xe   : > { %p696_p9 = por %p121_p6, %p47_p1  ;;  %p450_p12 = scmp.lt.s32.totalorder %s617_s17, 6 }
   0xf   : > { %s701_s26 = scalar_select %p38_p7, %s605_s14, %s40_s21  }
  0x10   : > { %s830_s25 = scalar_select %p696_p9, 1, 0 }
  0x11   : > { %p703_p11 = por %p127_p10, %p53_p3  ;;  %s153_s28 = sand.u32 1, %s605_s14  }
  0x12   : > { %s435_s29 = smul.u32 80, %s153_s28  ;;  %p712_p13 = pnand %p450_p12, %p686_p4 }
  0x13   : > { %s831_s27 = scalar_select %p703_p11, 1, 0 }
  0x14   : > { %s436_s30 = smul.u32 1280, %s613_s16  ;;  %s157_s8 = scalar_lea.vmem [#allocation2], %s435_s29 }
  0x15   : > { %s166_s9 = sshll.u32 %s157_s8, 4  ;;  %s724_s10 = scalar_lea.sflag [#allocation3], %s153_s28  ;;  %s721_s9 = int_to_ptr.vmem [resolvable:$true] %s166_s9 }
  0x16   : > { %s719_s7 = scalar_lea.hbm %s823_s0, %s436_s30  ;;  %p507_p2 = pneg %p712_p13 }
  0x17   : > { %s505_s11 = scalar_lea.hbm %s719_s7, 1280  ;;  %s510_s21 = scalar_lea.hbm %s823_s0, 7680 }
  0x18   : > { %p506_p1 = scmp.ne.s32.totalorder %s719_s7, %s505_s11  ;;  %p511_p5 = scmp.lt.u32.totalorder %s719_s7, %s823_s0 }
  0x19   : > { %p512_p6 = scmp.lt.u32.totalorder %s510_s21, %s505_s11  ;;  %p514_p10 = scmp.lt.u32.totalorder %s505_s11, %s719_s7 }
  0x1a   : > { %p508_p3 = pnand %p507_p2, %p506_p1 }
  0x1b   : > { %p513_p7 = por %p512_p6, %p511_p5 }
  0x1c   : > { %p509_p4 = pneg %p508_p3 }
  0x1d   : > { %p515_p12 = por %p514_p10, %p513_p7 }
  0x1f   : > { %p516_p0 = pnand %p515_p12, %p509_p4 }
  0x21   : > { %519 = shalt.err (!%p516_p0)
}
  0x22   : > { %s520_s28 = scalar_lea.vmem %s721_s9, 1280  ;;  %s619_s29 = smov [#allocation2]  }
  0x23   : > { %p521_p1 = scmp.ne.s32.totalorder %s721_s9, %s520_s28  ;;  %s525_s30 = sshll.u32 %s619_s29, 4  ;;  %s526_s30 = int_to_ptr.vmem [resolvable:$false] %s525_s30 }
  0x24   : > { %s527_s5 = scalar_lea.vmem %s526_s30, 2560  ;;  %p528_p9 = scmp.lt.s32.totalorder %s721_s9, %s526_s30 }
  0x25   : > { %p523_p3 = pnand %p521_p1, %p507_p2  ;;  %p529_p5 = scmp.lt.s32.totalorder %s527_s5, %s520_s28 }
  0x27   : > { %p524_p11 = pneg %p523_p3  ;;  %p530_p6 = por %p529_p5, %p528_p9 }
  0x29   : > { %p531_p7 = pnand %p530_p6, %p524_p11 }
  0x2b   : > { %534 = shalt.err (!%p531_p7)
}
  0x2c   : > { %s620_s6 = smov 256   ;;  %s621_s8 = smov 16  }
  0x2d   : > { %445 = dma.hbm_to_vmem [thread:$0]  (!%p712_p13), %s719_s7, 1280, %s721_s9, %s724_s10, %s620_s6, %s620_s6, %s621_s8  }
  0x2e   : > { %p174_p0 = scmp.lt.s32.totalorder %s617_s17, 7  ;;  %p833_p2 = scmp.ge.s32.totalorder %s617_s17, 1 }
  0x30   : > { %p175_p4 = pnand %p833_p2, %p174_p0 }
  0x31   : > { %s756_s11 = sand.u32 (!%p175_p4), 1, %s601_s13  }
  0x32   : > { %178 = sbr.rel (%p175_p4) target bundleno = 300 (0x12c), region = 32  ;;  %s181_s19 = scalar_lea.sflag (!%p175_p4), [#allocation3], %s756_s11 }
  0x33   : > { %s437_s18 = smul.u32 (!%p175_p4), 80, %s756_s11 }
  0x35   : > { %s184_s21 = scalar_lea.vmem (!%p175_p4), [#allocation2], %s437_s18 }
  0x39   : > { %588 = dma.done.wait (%p692_p8), %s181_s19, 1280  }
  0x3a   : > { %590 = vsyncadd (%p692_p8), %s181_s19, 4294966016  ;;  %v622_v0 = vmov 0.0   ;;  %v623_v1 = vmov 0   ;;  %v211_v2 = vld [vmem:[%s184_s21 + $0x8] sm:$0xff]  ;;  %v213_v3 = vld [vmem:[%s184_s21 + $0x18] sm:$0xff]  ;;  %vm230_vm0 = vcmask 1043456  }
  0x3b   : > { %301 = vmatprep.mubr.f32.mxu0 %v622_v0  ;;  %504 = vset.pattern.permute.xlu0 %v623_v1  ;;  %v210_v4 = vld [vmem:[%s184_s21] sm:$0xff]  ;;  %v427_v5 = vpack.c.bf16 %v213_v3, %v211_v2  ;;  %v212_v6 = vld [vmem:[%s184_s21 + $0x10] sm:$0xff]  ;;  %v215_v7 = vld [vmem:[%s184_s21 + $0x28] sm:$0xff]  ;;  %vm226_vm1 = vcmask 293888   ;;  %s417_s10 = sshll.u32 %s756_s11, 4  ;;  %s426_s22 = sshll.u32 %s609_s15, 8 }
  0x3c   : > { %v217_v8 = vld [vmem:[%s184_s21 + $0x38] sm:$0xff]  ;;  %v429_v9 = vpack.c.bf16 %v212_v6, %v210_v4  ;;  %v214_v11 = vld [vmem:[%s184_s21 + $0x20] sm:$0xff]  ;;  %v216_v12 = vld [vmem:[%s184_s21 + $0x30] sm:$0xff]  ;;  %s206_s23 = scalar_lea.vmem [#allocation5], %s417_s10  ;;  %s775_s5 = scalar_lea.hbm %s826_s3, %s426_s22 }
  0x3d   : > { %v431_v10 = vpack.c.bf16 %v217_v8, %v215_v7  ;;  %428 = vmatprep.subr.bf16.mxu0 %v427_v5  ;;  %v220_v13 = vld [vmem:[%s825_s2] sm:$0xff]  ;;  %v433_v14 = vpack.c.bf16 %v216_v12, %v214_v11  ;;  %v219_v15 = vld [vmem:[%s184_s21 + $0x48] sm:$0xf]  ;;  %s327_s28 = sshll.u32 %s206_s23, 4  ;;  %s311_s6 = scalar_lea.sflag [#allocation4], %s756_s11  ;;  %s777_s28 = int_to_ptr.vmem [resolvable:$true] %s327_s28 }
  0x3e   : > { %430 = vmatpush1.bf16.msra.mxu0 %v429_v9  ;;  %223 = vperm.xlu0 %504, %v220_v13   ;;  %v218_v16 = vld [vmem:[%s184_s21 + $0x40] sm:$0xf]  ;;  %s535_s15 = scalar_lea.vmem %s777_s28, 256  ;;  %p834_p9 = scmp.ne.s32.totalorder %s830_s25, 0 }
  0x3f   : > { %432 = vmatprep.subr.bf16.mxu0 %v431_v10  ;;  %v209_v17 = vld [vmem:[%s824_s1] sm:$0xff]  ;;  %p536_p8 = scmp.ne.s32.totalorder %s777_s28, %s535_s15  ;;  %s624_s8 = smov [#allocation5]  }
  0x40   : > { %s539_s18 = sshll.u32 %s624_s8, 4  ;;  %s540_s18 = int_to_ptr.vmem [resolvable:$false] %s539_s18 }
  0x41   : > { %p537_p11 = pnand %p536_p8, %p834_p9  ;;  %s541_s19 = scalar_lea.vmem %s540_s18, 512 }
  0x42   : > { %434 = vmatpush1.bf16.msra.mxu0 %v433_v14  ;;  %p542_p10 = scmp.lt.s32.totalorder %s777_s28, %s540_s18  ;;  %p543_p12 = scmp.lt.s32.totalorder %s541_s19, %s535_s15 }
  0x43   : > { %418 = vmatprep.subr.msk.mxu0 %vm230_vm0, %v219_v15  ;;  %p538_p13 = pneg %p537_p11 }
  0x44   : > { %p544_p1 = por %p543_p12, %p542_p10 }
  0x46   : > { %419 = vmatpush1.msk.msra.mxu0 %vm230_vm0, %v218_v16  ;;  %p545_p3 = pnand %p544_p1, %p538_p13 }
  0x47   : > { %420 = vmatmul.mubr.msk.f32.vlgmr.msra.gmra.mrb[0].mxu0 %vm226_vm1, %v209_v17 }
  0xbd   : > { %v224_v18 = vpop.permute.xlu0 %223 }
 0x11a   : > { %v303_v19 = vpop.f32.mrb[0].mxu0 }
 0x11b   : > { %v304_v20 = vadd.f32 %v303_v19, %v224_v18  ;;  %v305_v21 = vpop.f32.mrb[1].mxu0 }
 0x11c   : > { %v306_v22 = vadd.f32 %v305_v21, %v224_v18 }
 0x11d   : > { %308 = vst [vmem:[%s206_s23] sm:$0xff] %v304_v20 }
 0x11e   : > { %309 = vst [vmem:[%s206_s23 + $0x8] sm:$0xff] %v306_v22 }
 0x11f   : > { %548 = shalt.err (!%p545_p3)
}
 0x120   : > { %s549_s11 = scalar_lea.hbm %s775_s5, 256  ;;  %s553_s24 = scalar_lea.hbm %s826_s3, 1536 }
 0x121   : > { %p550_p5 = scmp.ne.s32.totalorder %s775_s5, %s549_s11  ;;  %p554_p0 = scmp.lt.u32.totalorder %s775_s5, %s826_s3 }
 0x122   : > { %p555_p2 = scmp.lt.u32.totalorder %s553_s24, %s549_s11  ;;  %p557_p8 = scmp.lt.u32.totalorder %s549_s11, %s775_s5 }
 0x123   : > { %p551_p6 = pnand %p550_p5, %p834_p9 }
 0x124   : > { %p556_p4 = por %p555_p2, %p554_p0 }
 0x125   : > { %p552_p7 = pneg %p551_p6 }
 0x126   : > { %p558_p11 = por %p557_p8, %p556_p4 }
 0x128   : > { %p559_p13 = pnand %p558_p11, %p552_p7 }
 0x12a   : > { %562 = shalt.err (!%p559_p13)
}
 0x12b   : > { %440 = dma.vmem_to_hbm [thread:$0]  (%p834_p9), %s777_s28, 256, %s775_s5, %s311_s6  }
 0x12c PF: > { %p451_p10 = scmp.ge.s32.totalorder %s617_s17, 2  ;;  %s339_s10 = sand.u32 1, %s597_s12  }
 0x12d   : > { %p835_p12 = scmp.ne.s32.totalorder %s831_s27, 0  ;;  %s340_s22 = scalar_lea.sflag [#allocation4], %s339_s10 }
 0x12f   : > { %p447_p1 = pnand %p451_p10, %p835_p12 }
 0x131   : > { %592 = dma.done.wait (!%p447_p1), %s340_s22, 256  }
 0x132   : > { %594 = vsyncadd (!%p447_p1), %s340_s22, 4294967040  ;;  %s19_s17 = sadd.s32 1, %s617_s17   ;;  %s836_s12 = smov %s601_s13 }
 0x133   : > { %p16_p3 = scmp.ge.s32.totalorder %s19_s17, 8   ;;  %s837_s13 = smov %s605_s14 }
 0x134   : > { %s838_s14 = smov %s701_s26  ;;  %s839_s15 = smov %s613_s16 }
 0x135   : > { %s840_s16 = smov %s842_s20  ;;  %18 = sbr.rel (!%p16_p3) target bundleno = 6 (0x6), region = 77 }
 0x13c   :  { %345 = vsyncpa [#allocation3], 1 }
 0x13d   :  { %347 = vsyncpa [#allocation3 + $0x1], 1 }
 0x13e   :  { %348 = vsyncpa [#allocation4], 1 }
 0x13f   :  { %350 = vsyncpa [#allocation4 + $0x1], 1 }

</bundles_post_ra>
